<compile_context>
chip_gen: v6e
topology: v6e:2x2x1
jax: 0.10.0
libtpu: 0.0.40
codegen_flags: <defaults>
</compile_context>

<pallas_src>
import functools

import jax
import jax.numpy as jnp
from jax import lax
from jax.experimental import pallas as pl
from jax.experimental.pallas import tpu as pltpu


_SUPPORTED = ('exp', 'exp_clamp', 'binary', 'softmax', 'identity')


def _round_up(x, m):
    return ((x + m - 1) // m) * m


def _adv_mlp_kernel(s_ref, a_ref, w1s_ref, w1a_ref, b1_ref, w2_ref, b2_ref,
                    o_ref, *, filter_type, beta, compute_dtype):
    """One batch tile, batch on the lane axis.

    adv^T = w2^T relu(W1_s^T s^T + W1_a^T a^T + b1) + b2   -> [1, TB]
    then the advantage filter ('raw' = emit un-clamped adv for the softmax
    second pass) and clamp(-100, 100).
    """
    # In-kernel cast: HBM reads stay in the caller's dtype (no wrapper astype
    # round trip); MXU operands become compute_dtype (bf16 default -> single
    # MXU pass); accumulation and all post-matmul math stay f32.
    sd = s_ref[...].astype(compute_dtype)
    ad = a_ref[...].astype(compute_dtype)

    dn = (((1,), (1,)), ((), ()))  # contract the (small) feature dims
    # Layer 1 on the MXU; single accumulating expression (MRB-friendly on v7x).
    h = (lax.dot_general(w1s_ref[...], sd, dn, preferred_element_type=jnp.float32)
         + lax.dot_general(w1a_ref[...], ad, dn, preferred_element_type=jnp.float32))
    h = jnp.maximum(h + b1_ref[...], 0.0)                                # [H, TB]

    # Layer 2 (output width 1): VPU multiply + sublane reduce.
    adv = jnp.sum(h * w2_ref[...], axis=0, keepdims=True) + b2_ref[0, 0]  # [1, TB]

    if filter_type == 'raw':              # softmax pass 1: un-clamped adv
        o_ref[...] = adv
        return
    if filter_type == 'exp':
        fv = jnp.exp(beta * adv)
    elif filter_type == 'exp_clamp':
        fv = jnp.exp(beta * jnp.clip(adv, -5.0, 5.0))
    elif filter_type == 'binary':
        # NOTE: with compute_dtype=bf16 the sign decision can flip for adv
        # values within bf16 rounding of zero relative to an f32 reference.
        fv = (adv >= 0.0).astype(jnp.float32)
    elif filter_type == 'identity':
        fv = jnp.ones_like(adv)
    else:
        raise ValueError(f"Unsupported filter type '{filter_type}'")
    o_ref[...] = jnp.clip(fv, -100.0, 100.0)


def _softmax_finalize_kernel(adv_ref, o_ref, *, beta, batch):
    """'softmax' pass 2: fv = B * softmax(beta * adv) over the full [1, B] row."""
    z = beta * adv_ref[...]
    z = z - jnp.max(z, axis=1, keepdims=True)
    e = jnp.exp(z)
    fv = float(batch) * e / jnp.sum(e, axis=1, keepdims=True)
    o_ref[...] = jnp.clip(fv, -100.0, 100.0)


def make_adv_estimator_params(key, state_dim, action_dim, hidden_dim):
    """Deterministic synthetic params for the 2-layer MLP advantage estimator."""
    d = state_dim + action_dim
    k1, k2, k3, k4 = jax.random.split(key, 4)
    w1 = jax.random.normal(k1, (d, hidden_dim), jnp.float32) * (1.0 / jnp.sqrt(d))
    b1 = jax.random.normal(k2, (1, hidden_dim), jnp.float32) * 0.01
    w2 = jax.random.normal(k3, (hidden_dim, 1), jnp.float32) * (1.0 / jnp.sqrt(hidden_dim))
    b2 = jax.random.normal(k4, (1, 1), jnp.float32) * 0.01
    return w1, b1, w2, b2


def adv_estimator_filter(s, a, params, filter_type='binary', beta=1.0,
                         block_b=8192, compute_dtype=jnp.bfloat16):
    """Equivalent of AdvEstimatorFilter(adv_estimator, filter_type, beta)(s, a).

    s / a are read from HBM in whatever dtype they arrive in (pass bf16
    producers to halve HBM read traffic); MXU operands are cast to
    compute_dtype inside the kernel.  Returns the per-row filter value [B].
    """
    if filter_type not in _SUPPORTED:
        raise ValueError(f"Unsupported filter type '{filter_type}'")

    w1, b1, w2, b2 = params
    batch, s_dim = s.shape
    a_dim = a.shape[1]
    hidden = w1.shape[1]

    # ---- batch tiling (no wrapper-side padding; boundary block is partial) ---
    tb_full = _round_up(batch, 128)
    tb = min(_round_up(max(block_b, 128), 128), tb_full)
    if tb >= tb_full and batch > 128:
        # Keep >= 2 grid steps when the batch allows it, so the ("parallel",)
        # axis shards across v7x's two TensorCores and the pipeline overlaps.
        tb = max(128, _round_up((batch + 1) // 2, 128))
    nb = pl.cdiv(batch, tb)
    # ~2 KiB/row of double-buffered (lane-padded) s/a blocks + ~1 KiB/row of
    # in-kernel temporaries, plus slack.  Conservative w.r.t. v7x's 64 MiB at
    # the default tile; users can raise block_b on v6e/v5e (128 MiB VMEM).
    vmem_bytes = min(tb * 3 * 1024 + (16 << 20), 96 << 20)

    # ---- tiny once-per-call weight prep (fuses the concat into the kernel) --
    w1s_t = jnp.transpose(w1[:s_dim]).astype(compute_dtype)   # [H, S]
    w1a_t = jnp.transpose(w1[s_dim:]).astype(compute_dtype)   # [H, A]
    b1_c = jnp.reshape(b1, (hidden, 1)).astype(jnp.float32)   # [H, 1]
    w2_c = jnp.reshape(w2, (hidden, 1)).astype(jnp.float32)   # [H, 1]
    b2_s = jnp.reshape(b2, (1, 1)).astype(jnp.float32)        # SMEM scalar

    ft = 'raw' if filter_type == 'softmax' else filter_type
    kernel = functools.partial(_adv_mlp_kernel, filter_type=ft,
                               beta=float(beta), compute_dtype=compute_dtype)

    out = pl.pallas_call(
        kernel,
        out_shape=jax.ShapeDtypeStruct((1, batch), jnp.float32),
        grid=(nb,),
        in_specs=[
            pl.BlockSpec((tb, s_dim), lambda i: (i, 0)),           # s tile
            pl.BlockSpec((tb, a_dim), lambda i: (i, 0)),           # a tile
            pl.BlockSpec((hidden, s_dim), lambda i: (0, 0)),       # W1_s^T (resident)
            pl.BlockSpec((hidden, a_dim), lambda i: (0, 0)),       # W1_a^T (resident)
            pl.BlockSpec((hidden, 1), lambda i: (0, 0)),           # b1 column
            pl.BlockSpec((hidden, 1), lambda i: (0, 0)),           # w2 column
            pl.BlockSpec(memory_space=pltpu.MemorySpace.SMEM),     # b2 scalar
        ],
        out_specs=pl.BlockSpec((1, tb), lambda i: (0, i)),         # lane-dense
        compiler_params=pltpu.CompilerParams(
            dimension_semantics=("parallel",),
            vmem_limit_bytes=vmem_bytes),
    )(s, a, w1s_t, w1a_t, b1_c, w2_c, b2_s)

    if filter_type == 'softmax':
        out = pl.pallas_call(
            functools.partial(_softmax_finalize_kernel,
                              beta=float(beta), batch=batch),
            out_shape=jax.ShapeDtypeStruct((1, batch), jnp.float32),
            grid=(1,),
            in_specs=[pl.BlockSpec((1, batch), lambda i: (0, 0))],
            out_specs=pl.BlockSpec((1, batch), lambda i: (0, 0)),
            compiler_params=pltpu.CompilerParams(
                dimension_semantics=("arbitrary",),
                vmem_limit_bytes=min(batch * 320 + (4 << 20), 96 << 20)),
        )(out)

    # PyTorch adv / filter_val is a per-batch scalar -> return shape [B]
    return out[0, :]


def _reference(s, a, params, filter_type='binary', beta=1.0,
               compute_dtype=jnp.float32):
    """Pure-JAX reference mirroring the PyTorch forward semantics."""
    w1, b1, w2, b2 = params
    x = jnp.concatenate([s, a], axis=-1).astype(compute_dtype)
    h = jnp.maximum(jnp.dot(x, w1.astype(compute_dtype),
                            preferred_element_type=jnp.float32) + b1, 0.0)
    adv = (jnp.dot(h, w2) + b2)[:, 0]
    if filter_type == 'binary':
        fv = (adv >= 0.0).astype(jnp.float32)
    elif filter_type == 'exp':
        fv = jnp.exp(beta * adv)
    elif filter_type == 'exp_clamp':
        fv = jnp.exp(beta * jnp.clip(adv, -5.0, 5.0))
    elif filter_type == 'softmax':
        fv = adv.shape[0] * jax.nn.softmax(beta * adv, axis=0)
    elif filter_type == 'identity':
        fv = jnp.ones_like(adv)
    else:
        raise ValueError(filter_type)
    return jnp.clip(fv, -100.0, 100.0)


if __name__ == "__main__":
    B, S_DIM, A_DIM, HIDDEN = 8, 16, 8, 32

    key = jax.random.PRNGKey(0)
    k_s, k_a, k_p, k_s2, k_a2 = jax.random.split(key, 5)
    s = jax.random.normal(k_s, (B, S_DIM), jnp.float32)
    a = jax.random.normal(k_a, (B, A_DIM), jnp.float32)
    params = make_adv_estimator_params(k_p, S_DIM, A_DIM, HIDDEN)

    ok = True

    # f32 MXU path: all supported filter types vs the pure-JAX reference.
    for ftype in ('binary', 'exp', 'exp_clamp', 'softmax', 'identity'):
        out = jax.block_until_ready(
            adv_estimator_filter(s, a, params, filter_type=ftype, beta=1.0,
                                 compute_dtype=jnp.float32))
        ref = _reference(s, a, params, filter_type=ftype, beta=1.0)
        if out.shape != (B,) or not jnp.allclose(out, ref, atol=1e-4, rtol=1e-4):
            ok = False
            print(f"MISMATCH for filter_type={ftype} (f32, B={B})")

    # bf16 MXU-operand path (default); accumulation + filter math stay f32.
    # ('binary' excluded: bf16 rounding can flip the adv>=0 decision near 0.)
    for ftype in ('exp_clamp', 'identity', 'softmax'):
        out = jax.block_until_ready(
            adv_estimator_filter(s, a, params, filter_type=ftype, beta=1.0,
                                 compute_dtype=jnp.bfloat16))
        ref = _reference(s, a, params, filter_type=ftype, beta=1.0,
                         compute_dtype=jnp.bfloat16)
        if not jnp.allclose(out, ref, atol=2e-2, rtol=2e-2):
            ok = False
            print(f"MISMATCH for filter_type={ftype} (bf16, B={B})")

    # Multi-tile grid with a partial boundary block (no wrapper-side padding).
    B2 = 300
    s2 = jax.random.normal(k_s2, (B2, S_DIM), jnp.float32)
    a2 = jax.random.normal(k_a2, (B2, A_DIM), jnp.float32)
    for ftype in ('binary', 'softmax'):
        out = jax.block_until_ready(
            adv_estimator_filter(s2, a2, params, filter_type=ftype, beta=1.0,
                                 block_b=128, compute_dtype=jnp.float32))
        ref = _reference(s2, a2, params, filter_type=ftype, beta=1.0)
        if out.shape != (B2,) or not jnp.allclose(out, ref, atol=1e-4, rtol=1e-4):
            ok = False
            print(f"MISMATCH for filter_type={ftype} (f32, B={B2})")

    if ok:
        print("KERNEL_OK")
</pallas_src>

<mosaic_0001>
module attributes {stable_mosaic.version = 11 : i64} {
  func.func @_adv_mlp_kernel(%arg0: i32, %arg1: memref<128x16xf32, #tpu.memory_space<vmem>>, %arg2: memref<128x8xf32, #tpu.memory_space<vmem>>, %arg3: memref<32x16xf32, #tpu.memory_space<vmem>>, %arg4: memref<32x8xf32, #tpu.memory_space<vmem>>, %arg5: memref<32x1xf32, #tpu.memory_space<vmem>>, %arg6: memref<32x1xf32, #tpu.memory_space<vmem>>, %arg7: memref<1x1xf32, #tpu.memory_space<smem>>, %arg8: memref<1x128xf32, #tpu.memory_space<vmem>>) attributes {dimension_semantics = [#tpu.dimension_semantics<parallel>], iteration_bounds = array<i64: 1>, scalar_prefetch = 0 : i64, scratch_operands = 0 : i64, tpu.core_type = #tpu.core_type<tc>, window_params = [{transform_indices = @transform_0, window_bounds = array<i64: 128, 16>}, {transform_indices = @transform_1, window_bounds = array<i64: 128, 8>}, {pipeline_mode = #tpu.pipeline_mode<synchronous>, transform_indices = @transform_2, window_bounds = array<i64: 32, 16>}, {pipeline_mode = #tpu.pipeline_mode<synchronous>, transform_indices = @transform_3, window_bounds = array<i64: 32, 8>}, {pipeline_mode = #tpu.pipeline_mode<synchronous>, transform_indices = @transform_4, window_bounds = array<i64: 32, 1>}, {pipeline_mode = #tpu.pipeline_mode<synchronous>, transform_indices = @transform_5, window_bounds = array<i64: 32, 1>}, {transform_indices = @transform_6, window_bounds = array<i64: 1, 1>}, {transform_indices = @transform_7, window_bounds = array<i64: 1, 128>}]} {
    %c0 = arith.constant 0 : index
    %c0_0 = arith.constant 0 : index
    %0 = vector.load %arg1[%c0, %c0_0] : memref<128x16xf32, #tpu.memory_space<vmem>>, vector<128x16xf32>
    %c0_1 = arith.constant 0 : index
    %c0_2 = arith.constant 0 : index
    %1 = vector.load %arg2[%c0_1, %c0_2] : memref<128x8xf32, #tpu.memory_space<vmem>>, vector<128x8xf32>
    %c0_3 = arith.constant 0 : index
    %c0_4 = arith.constant 0 : index
    %2 = vector.load %arg3[%c0_3, %c0_4] : memref<32x16xf32, #tpu.memory_space<vmem>>, vector<32x16xf32>
    %cst = arith.constant dense<0.000000e+00> : vector<32x128xf32>
    %3 = tpu.matmul %2, %0, %cst {dimension_numbers = #tpu.dot_dimension_numbers<[1], [1], [0], [0], [0, 0, 1, 0], [], []>} : vector<32x16xf32>, vector<128x16xf32>, vector<32x128xf32> -> vector<32x128xf32>
    %c0_5 = arith.constant 0 : index
    %c0_6 = arith.constant 0 : index
    %4 = vector.load %arg4[%c0_5, %c0_6] : memref<32x8xf32, #tpu.memory_space<vmem>>, vector<32x8xf32>
    %cst_7 = arith.constant dense<0.000000e+00> : vector<32x128xf32>
    %5 = tpu.matmul %4, %1, %cst_7 {dimension_numbers = #tpu.dot_dimension_numbers<[1], [1], [0], [0], [0, 0, 1, 0], [], []>} : vector<32x8xf32>, vector<128x8xf32>, vector<32x128xf32> -> vector<32x128xf32>
    %6 = arith.addf %3, %5 : vector<32x128xf32>
    %c0_8 = arith.constant 0 : index
    %c0_9 = arith.constant 0 : index
    %7 = vector.load %arg5[%c0_8, %c0_9] : memref<32x1xf32, #tpu.memory_space<vmem>>, vector<32x1xf32>
    %8 = vector.broadcast %7 : vector<32x1xf32> to vector<32x128xf32>
    %9 = arith.addf %6, %8 : vector<32x128xf32>
    %cst_10 = arith.constant 0.000000e+00 : f32
    %10 = vector.broadcast %cst_10 : f32 to vector<32x128xf32>
    %11 = arith.maximumf %9, %10 : vector<32x128xf32>
    %c0_11 = arith.constant 0 : index
    %c0_12 = arith.constant 0 : index
    %12 = vector.load %arg6[%c0_11, %c0_12] : memref<32x1xf32, #tpu.memory_space<vmem>>, vector<32x1xf32>
    %13 = vector.broadcast %12 : vector<32x1xf32> to vector<32x128xf32>
    %14 = arith.mulf %11, %13 : vector<32x128xf32>
    %cst_13 = arith.constant dense<0.000000e+00> : vector<128xf32>
    %15 = vector.multi_reduction <add>, %14, %cst_13 [0] : vector<32x128xf32> to vector<128xf32>
    %16 = vector.shape_cast %15 : vector<128xf32> to vector<1x128xf32>
    %c0_14 = arith.constant 0 : index
    %c0_15 = arith.constant 0 : index
    %17 = memref.load %arg7[%c0_14, %c0_15] : memref<1x1xf32, #tpu.memory_space<smem>>
    %18 = vector.broadcast %17 : f32 to vector<1x128xf32>
    %19 = arith.addf %16, %18 : vector<1x128xf32>
    %cst_16 = arith.constant 0.000000e+00 : f32
    %20 = vector.broadcast %cst_16 : f32 to vector<1x128xf32>
    %21 = arith.cmpf oge, %19, %20 : vector<1x128xf32>
    %22 = arith.extui %21 : vector<1x128xi1> to vector<1x128xi32>
    %23 = arith.sitofp %22 : vector<1x128xi32> to vector<1x128xf32>
    %cst_17 = arith.constant -1.000000e+02 : f32
    %cst_18 = arith.constant 1.000000e+02 : f32
    %24 = vector.broadcast %cst_17 : f32 to vector<1x128xf32>
    %25 = arith.maximumf %24, %23 : vector<1x128xf32>
    %26 = vector.broadcast %cst_18 : f32 to vector<1x128xf32>
    %27 = arith.minimumf %26, %25 : vector<1x128xf32>
    %c0_19 = arith.constant 0 : index
    %c0_20 = arith.constant 0 : index
    %28 = vector.load %arg8[%c0_19, %c0_20] : memref<1x128xf32, #tpu.memory_space<vmem>>, vector<1x128xf32>
    tpu.vector_store %arg8[%c0_19, %c0_20], %27 {strides = array<i32>} : memref<1x128xf32, #tpu.memory_space<vmem>>, vector<1x128xf32>,
    return
  }
  func.func @transform_0(%arg0: i32) -> (i32, i32) {
    %c0_i32 = arith.constant 0 : i32
    %c0_i32_0 = arith.constant 0 : i32
    return %arg0, %c0_i32 : i32, i32
  }
  func.func @transform_1(%arg0: i32) -> (i32, i32) {
    %c0_i32 = arith.constant 0 : i32
    %c0_i32_0 = arith.constant 0 : i32
    return %arg0, %c0_i32 : i32, i32
  }
  func.func @transform_2(%arg0: i32) -> (i32, i32) {
    %c0_i32 = arith.constant 0 : i32
    %c0_i32_0 = arith.constant 0 : i32
    %c0_i32_1 = arith.constant 0 : i32
    return %c0_i32, %c0_i32_0 : i32, i32
  }
  func.func @transform_3(%arg0: i32) -> (i32, i32) {
    %c0_i32 = arith.constant 0 : i32
    %c0_i32_0 = arith.constant 0 : i32
    %c0_i32_1 = arith.constant 0 : i32
    return %c0_i32, %c0_i32_0 : i32, i32
  }
  func.func @transform_4(%arg0: i32) -> (i32, i32) {
    %c0_i32 = arith.constant 0 : i32
    %c0_i32_0 = arith.constant 0 : i32
    %c0_i32_1 = arith.constant 0 : i32
    return %c0_i32, %c0_i32_0 : i32, i32
  }
  func.func @transform_5(%arg0: i32) -> (i32, i32) {
    %c0_i32 = arith.constant 0 : i32
    %c0_i32_0 = arith.constant 0 : i32
    %c0_i32_1 = arith.constant 0 : i32
    return %c0_i32, %c0_i32_0 : i32, i32
  }
  func.func @transform_6(%arg0: i32) -> (i32, i32) {
    %c0_i32 = arith.constant 0 : i32
    %c0_i32_0 = arith.constant 0 : i32
    %c0_i32_1 = arith.constant 0 : i32
    return %c0_i32, %c0_i32_0 : i32, i32
  }
  func.func @transform_7(%arg0: i32) -> (i32, i32) {
    %c0_i32 = arith.constant 0 : i32
    %c0_i32_0 = arith.constant 0 : i32
    return %c0_i32, %arg0 : i32, i32
  }
}

</mosaic_0001>

<bundles_post_ra>
// kernel: tpu_custom_call.1
= control target key start
LH: loop header
LB: loop body
LE: loop exit
PB: predicated region body
PF: predicated region fallthrough
CT: control target
= control target key end

     0   :  { %vm68_vm0 = vcmask 64512   ;;  %vm214_vm1 = vcmask 130048   ;;  %v637_v6 = vmov 0   ;;  %s902_s0 = inlined_call_operand.vmem [shape: f32[8,16], index: 0, kind: input, shape index: {}]   ;;  %s903_s1 = inlined_call_operand.vmem [shape: f32[8,8], index: 1, kind: input, shape index: {}]   ;;  %s904_s2 = inlined_call_operand.vmem [shape: f32[32,16], index: 2, kind: input, shape index: {}]   ;;  %s905_s3 = inlined_call_operand.vmem [shape: f32[32,8], index: 3, kind: input, shape index: {}]   ;;  %s906_s4 = inlined_call_operand.vmem [shape: f32[32,1], index: 4, kind: input, shape index: {}]   ;;  %s907_s5 = inlined_call_operand.vmem [shape: f32[32,1], index: 5, kind: input, shape index: {}]   ;;  %s908_s6 = inlined_call_operand.<no memory space> [shape: f32[1,1], index: 6, kind: input, shape index: {}]   ;;  %s909_s7 = inlined_call_operand.hbm [shape: f32[1,8], index: 7, kind: output, shape index: {}]  }
   0x1   :  { %v59_v0 = vld [vmem:[%s903_s1 + $0x78] sm:$0xff]  ;;  %v58_v2 = vld [vmem:[%s903_s1 + $0x70] sm:$0xff]  ;;  %v57_v4 = vld [vmem:[%s903_s1 + $0x68] sm:$0xff]  ;;  %613 = vset.pattern.permute.xlu0 %v637_v6  ;;  %614 = vset.pattern.permute.xlu1 %v637_v6 }
   0x2   :  { %v43_v1 = vld [vmem:[%s902_s0 + $0x78] sm:$0xff]  ;;  %534 = vmatprep.subr.msk.mxu0 %vm68_vm0, %v59_v0  ;;  %v42_v3 = vld [vmem:[%s902_s0 + $0x70] sm:$0xff]  ;;  %v41_v5 = vld [vmem:[%s902_s0 + $0x68] sm:$0xff] }
   0x3   :  { %572 = vmatprep.subr.msk.mxu1 %vm214_vm1, %v43_v1  ;;  %535 = vmatpush3.xpose.msk.msra.mxu0 %vm68_vm0, %v59_v0  ;;  %v56_v7 = vld [vmem:[%s903_s1 + $0x60] sm:$0xff]  ;;  %v55_v11 = vld [vmem:[%s903_s1 + $0x58] sm:$0xff]  ;;  %v362_v14 = vld [vmem:[%s906_s4 + $0x10] sm:$0xff] }
   0x4   :  { %573 = vmatpush3.xpose.msk.msra.mxu1 %vm214_vm1, %v43_v1  ;;  %536 = vmatprep.subr.msk.mxu0 %vm68_vm0, %v58_v2  ;;  %v40_v8 = vld [vmem:[%s902_s0 + $0x60] sm:$0xff]  ;;  %v39_v12 = vld [vmem:[%s902_s0 + $0x58] sm:$0xff]  ;;  %v54_v15 = vld [vmem:[%s903_s1 + $0x50] sm:$0xff] }
   0x5   :  { %574 = vmatprep.subr.msk.mxu1 %vm214_vm1, %v42_v3  ;;  %v64_v9 = vld [vmem:[%s905_s3] sm:$0xff]  ;;  %v38_v16 = vld [vmem:[%s902_s0 + $0x50] sm:$0xff]  ;;  %376 = vperm.xlu1 %614, %v362_v14  }
   0x6   :  { %v60_v10 = vld [vmem:[%s904_s2] sm:$0xff]  ;;  %566 = vmatprep.mubr.msk.f32.mxu0 %vm68_vm0, %v64_v9 }
   0x7   :  { %537 = vmatpush3.xpose.msk.msra.mxu0 %vm68_vm0, %v58_v2  ;;  %604 = vmatprep.mubr.msk.f32.mxu1 %vm214_vm1, %v60_v10  ;;  %v360_v13 = vld [vmem:[%s906_s4] sm:$0xff] }
   0x8   :  { %575 = vmatpush3.xpose.msk.msra.mxu1 %vm214_vm1, %v42_v3  ;;  %538 = vmatprep.subr.msk.mxu0 %vm68_vm0, %v57_v4 }
   0x9   :  { %576 = vmatprep.subr.msk.mxu1 %vm214_vm1, %v41_v5  ;;  %366 = vperm.xlu0 %613, %v360_v13  }
   0xb   :  { %539 = vmatpush3.xpose.msk.msra.mxu0 %vm68_vm0, %v57_v4 }
   0xc   :  { %577 = vmatpush3.xpose.msk.msra.mxu1 %vm214_vm1, %v41_v5  ;;  %540 = vmatprep.subr.msk.mxu0 %vm68_vm0, %v56_v7 }
   0xd   :  { %578 = vmatprep.subr.msk.mxu1 %vm214_vm1, %v40_v8 }
   0xf   :  { %541 = vmatpush3.xpose.msk.msra.mxu0 %vm68_vm0, %v56_v7 }
  0x10   :  { %579 = vmatpush3.xpose.msk.msra.mxu1 %vm214_vm1, %v40_v8  ;;  %542 = vmatprep.subr.msk.mxu0 %vm68_vm0, %v55_v11 }
  0x11   :  { %580 = vmatprep.subr.msk.mxu1 %vm214_vm1, %v39_v12 }
  0x12   :  { %13 = vsyncpa [#allocation4], 0  ;;  %v361_v17 = vld [vmem:[%s906_s4 + $0x8] sm:$0xff]  ;;  %v363_v18 = vld [vmem:[%s906_s4 + $0x18] sm:$0xff]  ;;  %s638_s21 = smov [#allocation3]  }
  0x13   :  { %543 = vmatpush3.xpose.msk.msra.mxu0 %vm68_vm0, %v55_v11  ;;  %v53_v19 = vld [vmem:[%s903_s1 + $0x48] sm:$0xff]  ;;  %371 = vperm.xlu0 %613, %v361_v17   ;;  %v392_v21 = vld [vmem:[%s907_s5] sm:$0xff]  ;;  %v394_v25 = vld [vmem:[%s907_s5 + $0x10] sm:$0xff]  ;;  %s444_s22 = sshll.u32 %s638_s21, 4  ;;  %s445_s22 = int_to_ptr.vmem [resolvable:$true] %s444_s22 }
  0x14   :  { %581 = vmatpush3.xpose.msk.msra.mxu1 %vm214_vm1, %v39_v12  ;;  %544 = vmatprep.subr.msk.mxu0 %vm68_vm0, %v54_v15  ;;  %v37_v20 = vld [vmem:[%s902_s0 + $0x48] sm:$0xff]  ;;  %v52_v23 = vld [vmem:[%s903_s1 + $0x40] sm:$0xff]  ;;  %v395_v26 = vld [vmem:[%s907_s5 + $0x18] sm:$0xff]  ;;  %s615_s23 = scalar_lea.vmem %s445_s22, 16  ;;  %s619_s24 = scalar_lea.vmem %s445_s22, 32 }
  0x15   :  { %582 = vmatprep.subr.msk.mxu1 %vm214_vm1, %v38_v16  ;;  %381 = vperm.xlu1 %614, %v363_v18   ;;  %v393_v22 = vld [vmem:[%s907_s5 + $0x8] sm:$0xff]  ;;  %v36_v24 = vld [vmem:[%s902_s0 + $0x40] sm:$0xff]  ;;  %v51_v27 = vld [vmem:[%s903_s1 + $0x38] sm:$0xff]  ;;  %p616_p0 = scmp.ne.s32.totalorder %s445_s22, %s615_s23  ;;  %p620_p1 = scmp.lt.s32.totalorder %s445_s22, %s445_s22 }
  0x16   :  { %v35_v28 = vld [vmem:[%s902_s0 + $0x38] sm:$0xff]  ;;  %v50_v29 = vld [vmem:[%s903_s1 + $0x30] sm:$0xff]  ;;  %v49_v31 = vld [vmem:[%s903_s1 + $0x28] sm:$0xff]  ;;  %p621_p2 = scmp.lt.s32.totalorder %s619_s24, %s615_s23 }
  0x17   :  { %545 = vmatpush3.xpose.msk.msra.mxu0 %vm68_vm0, %v54_v15  ;;  %398 = vperm.xlu0 %613, %v392_v21   ;;  %v34_v30 = vld [vmem:[%s902_s0 + $0x30] sm:$0xff]  ;;  %v33_v32 = vld [vmem:[%s902_s0 + $0x28] sm:$0xff]  ;;  %v48_v33 = vld [vmem:[%s903_s1 + $0x20] sm:$0xff] }
  0x18   :  { %583 = vmatpush3.xpose.msk.msra.mxu1 %vm214_vm1, %v38_v16  ;;  %546 = vmatprep.subr.msk.mxu0 %vm68_vm0, %v53_v19  ;;  %v32_v34 = vld [vmem:[%s902_s0 + $0x20] sm:$0xff]  ;;  %v47_v35 = vld [vmem:[%s903_s1 + $0x18] sm:$0xff]  ;;  %v46_v37 = vld [vmem:[%s903_s1 + $0x10] sm:$0xff]  ;;  %p622_p3 = por %p621_p2, %p620_p1 }
  0x19   :  { %584 = vmatprep.subr.msk.mxu1 %vm214_vm1, %v37_v20  ;;  %403 = vperm.xlu1 %614, %v393_v22   ;;  %v31_v36 = vld [vmem:[%s902_s0 + $0x18] sm:$0xff]  ;;  %v30_v38 = vld [vmem:[%s902_s0 + $0x10] sm:$0xff]  ;;  %v45_v39 = vld [vmem:[%s903_s1 + $0x8] sm:$0xff] }
  0x1a   :  { %v29_v40 = vld [vmem:[%s902_s0 + $0x8] sm:$0xff]  ;;  %v44_v41 = vld [vmem:[%s903_s1] sm:$0xff]  ;;  %v66_v45 = vld [vmem:[%s905_s3 + $0x10] sm:$0xff]  ;;  %p623_p4 = pnand %p622_p3, %p616_p0 }
  0x1b   :  { %547 = vmatpush3.xpose.msk.msra.mxu0 %vm68_vm0, %v53_v19  ;;  %408 = vperm.xlu0 %613, %v394_v25   ;;  %v28_v42 = vld [vmem:[%s902_s0] sm:$0xff]  ;;  %v65_v43 = vld [vmem:[%s905_s3 + $0x8] sm:$0xff]  ;;  %v62_v46 = vld [vmem:[%s904_s2 + $0x10] sm:$0xff]  ;;  %v430_v25 = vstv %s908_s6 }
  0x1c   :  { %585 = vmatpush3.xpose.msk.msra.mxu1 %vm214_vm1, %v37_v20  ;;  %548 = vmatprep.subr.msk.mxu0 %vm68_vm0, %v52_v23  ;;  %v61_v44 = vld [vmem:[%s904_s2 + $0x8] sm:$0xff]  ;;  %v67_v47 = vld [vmem:[%s905_s3 + $0x18] sm:$0xff] }
  0x1d   :  { %586 = vmatprep.subr.msk.mxu1 %vm214_vm1, %v36_v24  ;;  %413 = vperm.xlu1 %614, %v395_v26   ;;  %v63_v48 = vld [vmem:[%s904_s2 + $0x18] sm:$0xff] }
  0x1f   :  { %549 = vmatpush3.xpose.msk.msra.mxu0 %vm68_vm0, %v52_v23 }
  0x20   :  { %587 = vmatpush3.xpose.msk.msra.mxu1 %vm214_vm1, %v36_v24  ;;  %550 = vmatprep.subr.msk.mxu0 %vm68_vm0, %v51_v27 }
  0x21   :  { %588 = vmatprep.subr.msk.mxu1 %vm214_vm1, %v35_v28 }
  0x23   :  { %551 = vmatpush3.xpose.msk.msra.mxu0 %vm68_vm0, %v51_v27 }
  0x24   :  { %589 = vmatpush3.xpose.msk.msra.mxu1 %vm214_vm1, %v35_v28  ;;  %552 = vmatprep.subr.msk.mxu0 %vm68_vm0, %v50_v29  ;;  %v639_v28 = vmov 0.0  }
  0x25   :  { %590 = vmatprep.subr.msk.mxu1 %vm214_vm1, %v34_v30 }
  0x27   :  { %553 = vmatpush3.xpose.msk.msra.mxu0 %vm68_vm0, %v50_v29 }
  0x28   :  { %591 = vmatpush3.xpose.msk.msra.mxu1 %vm214_vm1, %v34_v30  ;;  %554 = vmatprep.subr.msk.mxu0 %vm68_vm0, %v49_v31 }
  0x29   :  { %592 = vmatprep.subr.msk.mxu1 %vm214_vm1, %v33_v32 }
  0x2b   :  { %555 = vmatpush3.xpose.msk.msra.mxu0 %vm68_vm0, %v49_v31 }
  0x2c   :  { %593 = vmatpush3.xpose.msk.msra.mxu1 %vm214_vm1, %v33_v32  ;;  %556 = vmatprep.subr.msk.mxu0 %vm68_vm0, %v48_v33 }
  0x2d   :  { %594 = vmatprep.subr.msk.mxu1 %vm214_vm1, %v32_v34 }
  0x2f   :  { %557 = vmatpush3.xpose.msk.msra.mxu0 %vm68_vm0, %v48_v33 }
  0x30   :  { %595 = vmatpush3.xpose.msk.msra.mxu1 %vm214_vm1, %v32_v34  ;;  %558 = vmatprep.subr.msk.mxu0 %vm68_vm0, %v47_v35 }
  0x31   :  { %596 = vmatprep.subr.msk.mxu1 %vm214_vm1, %v31_v36 }
  0x33   :  { %559 = vmatpush3.xpose.msk.msra.mxu0 %vm68_vm0, %v47_v35 }
  0x34   :  { %597 = vmatpush3.xpose.msk.msra.mxu1 %vm214_vm1, %v31_v36  ;;  %560 = vmatprep.subr.msk.mxu0 %vm68_vm0, %v46_v37 }
  0x35   :  { %598 = vmatprep.subr.msk.mxu1 %vm214_vm1, %v30_v38 }
  0x37   :  { %561 = vmatpush3.xpose.msk.msra.mxu0 %vm68_vm0, %v46_v37 }
  0x38   :  { %599 = vmatpush3.xpose.msk.msra.mxu1 %vm214_vm1, %v30_v38  ;;  %562 = vmatprep.subr.msk.mxu0 %vm68_vm0, %v45_v39 }
  0x39   :  { %600 = vmatprep.subr.msk.mxu1 %vm214_vm1, %v29_v40 }
  0x3b   :  { %563 = vmatpush3.xpose.msk.msra.mxu0 %vm68_vm0, %v45_v39 }
  0x3c   :  { %601 = vmatpush3.xpose.msk.msra.mxu1 %vm214_vm1, %v29_v40  ;;  %564 = vmatprep.subr.msk.mxu0 %vm68_vm0, %v44_v41 }
  0x3d   :  { %602 = vmatprep.subr.msk.mxu1 %vm214_vm1, %v28_v42 }
  0x3f   :  { %565 = vmatpush3.xpose.msk.msra.mxu0 %vm68_vm0, %v44_v41 }
  0x40   :  { %603 = vmatpush3.xpose.msk.msra.mxu1 %vm214_vm1, %v28_v42 }
  0x42   :  { %567 = vmatmul.mubr.msk.f32.vlgmr.msra.gmra.mxu0 %vm68_vm0, %v65_v43 }
  0x43   :  { %605 = vmatmul.mubr.msk.f32.vlgmr.msra.gmra.mxu1 %vm214_vm1, %v61_v44  ;;  %569 = vmatprep.mubr.msk.f32.mxu0 %vm68_vm0, %v66_v45 }
  0x44   :  { %607 = vmatprep.mubr.msk.f32.mxu1 %vm214_vm1, %v62_v46 }
  0x46   :  { %570 = vmatmul.mubr.msk.f32.gmra.mxu0 %vm68_vm0, %v67_v47 }
  0x47   :  { %608 = vmatmul.mubr.msk.f32.gmra.mxu1 %vm214_vm1, %v63_v48 }
  0x80   :  { %v377_v50 = vpop.permute.xlu1 %376 }
  0x84   :  { %v367_v49 = vpop.permute.xlu0 %366 }
  0x8e   :  { %v372_v51 = vpop.permute.xlu0 %371 }
  0x90   :  { %v382_v54 = vpop.permute.xlu1 %381 }
  0x92   :  { %v399_v62 = vpop.permute.xlu0 %398 }
  0x94   :  { %v404_v7 = vpop.permute.xlu1 %403 }
  0x96   :  { %v409_v13 = vpop.permute.xlu0 %408 }
  0x98   :  { %v414_v16 = vpop.permute.xlu1 %413 }
 0x102   :  { %v568_v52 = vpop.f32.mrf.mxu0 }
 0x103   :  { %v606_v53 = vpop.f32.mrf.mxu1 }
 0x104   :  { %v347_v55 = vadd.f32 %v606_v53, %v568_v52  ;;  %v195_v56 = vpop.f32.mrf.mxu0 }
 0x105   :  { %v341_v57 = vpop.f32.mrf.mxu1 }
 0x106   :  { %v385_v58 = vadd.f32 %v372_v51, %v347_v55  ;;  %v342_v59 = vadd.f32 %v341_v57, %v195_v56  ;;  %v571_v60 = vpop.f32.mrf.mxu0 }
 0x107   :  { %v609_v61 = vpop.f32.mrf.mxu1 }
 0x108   :  { %v384_v63 = vadd.f32 %v367_v49, %v342_v59  ;;  %v357_v0 = vadd.f32 %v609_v61, %v571_v60  ;;  %v205_v1 = vpop.f32.mrf.mxu0  ;;  %v389_v3 = vmax.f32 %v385_v58, 0.0 }
 0x109   :  { %v351_v2 = vpop.f32.mrf.mxu1 }
 0x10a   :  { %v388_v4 = vmax.f32 %v384_v63, 0.0  ;;  %v387_v5 = vadd.f32 %v382_v54, %v357_v0  ;;  %v352_v6 = vadd.f32 %v351_v2, %v205_v1  ;;  %v417_v10 = vmul.f32 %v404_v7, %v389_v3 }
 0x10c   :  { %v416_v8 = vmul.f32 %v399_v62, %v388_v4  ;;  %v386_v9 = vadd.f32 %v377_v50, %v352_v6  ;;  %v391_v11 = vmax.f32 %v387_v5, 0.0 }
 0x10e   :  { %v390_v12 = vmax.f32 %v386_v9, 0.0  ;;  %v420_v14 = vadd.f32 %v417_v10, %v416_v8  ;;  %v419_v17 = vmul.f32 %v414_v16, %v391_v11 }
 0x110   :  { %v418_v15 = vmul.f32 %v409_v13, %v390_v12 }
 0x112   :  { %v421_v18 = vadd.f32 %v420_v14, %v418_v15 }
 0x114   :  { %v422_v19 = vadd.f32 %v421_v18, %v419_v17 }
 0x116   :  { %v423_v20 = vrot.slane %v422_v19, 4 }
 0x118   :  { %v424_v21 = vadd.f32 %v423_v20, %v422_v19 }
 0x11a   :  { %v425_v22 = vrot.slane %v424_v21, 2 }
 0x11c   :  { %v426_v23 = vadd.f32 %v425_v22, %v424_v21 }
 0x11e   :  { %v427_v24 = vrot.slane %v426_v23, 1 }
 0x120   :  { %v428_v26 = vadd.f32 %v427_v24, %v426_v23 }
 0x122   :  { %v431_v27 = vadd.f32 %v430_v25, %v428_v26 }
 0x124   :  { %vm432_vm2 = vcmp.ge.f32.partialorder %v431_v27, 0.0 }
 0x125   :  { %v492_v29 = vsel %vm432_vm2, 1.0, %v639_v28 }
 0x126   :  { %v493_v30 = vclamps-f32 %v492_v29, 100.0 }
 0x128   :  { %437 = vst [vmem:[#allocation3] sm:$0x1] %v493_v30 }
 0x129   :  { %626 = shalt.err (!%p623_p4)
}
 0x12a   :  { %447 = dma.vmem_to_hbm [thread:$0]  %s445_s22, 16, %s909_s7, [#allocation4]  }
 0x12b   :  { %635 = dma.done.wait [#allocation4], 16  }
 0x12c   :  { %636 = vsyncadd [#allocation4], 4294967280 }
 0x12d   :  { %451 = vsyncpa [#allocation4], 1 }

</bundles_post_ra>
